<compile_context>
chip_gen: v7x
topology: tpu7x:2x2x1
jax: 0.10.0
libtpu: 0.0.40
codegen_flags: <defaults>
</compile_context>

<pallas_src>
import functools

import numpy as np
import jax
import jax.numpy as jnp
from jax.experimental import pallas as pl
from jax.experimental.pallas import tpu as pltpu


_NEG_BIG = -1e30  # finite "-inf" for padded vocab lanes (f32-safe; exp underflows to exactly 0)


def _round_up(x: int, m: int) -> int:
    return (x + m - 1) // m * m


def _vmem_capacity_bytes() -> int:
    """Per-core VMEM capacity; conservative fallback (v7x per-TC = 64 MiB) if the query fails."""
    try:
        cap = getattr(pltpu.get_tpu_info(), "vmem_capacity_bytes", None)
        if cap:
            return int(cap)
    except Exception:
        pass
    return 64 * 1024 * 1024


def choose_vocab_tile(vocab: int) -> int:
    """Lane tile (tn) of the vocab axis: one chunk for small vocabs, 2K lanes for large ones."""
    vocab_128 = _round_up(vocab, 128)
    if vocab_128 <= 4096:
        return vocab_128
    return 2048


def prepare_projection_params(weight, bias):
    """Cast / pad projection params ONCE (hoisted out of the per-call path).

    weight: (d_model, vocab) -> bf16, vocab padded to a multiple of the vocab tile.
    bias:   (vocab,)         -> f32 (1, vocab_p); padded lanes get -1e30 so max/LSE stay exact.
    """
    _, vocab = weight.shape
    tn = choose_vocab_tile(vocab)
    vocab_p = _round_up(vocab, tn)
    w = weight.astype(jnp.bfloat16)
    b = bias.astype(jnp.float32).reshape(1, vocab)
    if vocab_p != vocab:
        w = jnp.pad(w, ((0, 0), (0, vocab_p - vocab)))
        b = jnp.pad(b, ((0, 0), (0, vocab_p - vocab)), constant_values=_NEG_BIG)
    return w, b


def _choose_tiles(M, d_model, vocab_p, tn, out_itemsize, vmem_cap):
    """Pick (tm, tn) from a generation-aware VMEM budget."""
    budget = int(vmem_cap * 0.55)  # leave headroom for Mosaic internal scratch / regalloc
    # Shrink the vocab chunk if the double-buffered weight tile alone would eat the budget
    # (very large d_model); any power-of-two fraction of 2048 still divides vocab_p.
    while tn >= 512 and tn % 256 == 0 and 2 * d_model * tn * 2 > budget // 3:
        tn //= 2
    fixed = 2 * d_model * tn * 2 + 2 * tn * 4          # weight + bias tiles (double-buffered)
    per_row = (vocab_p * 4                              # cached-logits scratch row (f32)
               + 2 * d_model * 2                        # x row (double-buffered, bf16)
               + 2 * tn * out_itemsize                  # out row (double-buffered)
               + 4 * tn * 4                             # in-body f32 chunk temporaries
               + 8)                                     # m / l
    tm = (budget - fixed) // per_row
    tm = int(max(16, min(tm, 512)))
    tm = (tm // 16) * 16                                # bf16 sublane packing
    m16 = _round_up(M, 16)
    tm = min(tm, m16)
    # v7x has 2 TensorCores: make the "parallel" row axis have >= 2 steps when there are rows.
    if m16 // tm < 2 and m16 >= 32:
        tm = min(tm, _round_up((m16 + 1) // 2, 16))
    return max(16, tm), tn


def _proj_logsoftmax_kernel(x_ref, w_ref, b_ref, o_ref, logits_ref, m_ref, l_ref, *, tn):
    """Grid = (row_tiles, 2 phases, vocab_tiles).

    Phase 0 (per vocab chunk): logits = x @ W[:, chunk] + b[chunk]; cache the chunk into the
      (tm, vocab_p) f32 scratch and update the running max m / rescaled sum-of-exp l (flash-style).
    Phase 1 (per vocab chunk): out[chunk] = cached_logits[chunk] - (m + log(l)).
    """
    phase = pl.program_id(1)
    j = pl.program_id(2)
    start = pl.multiple_of(j * tn, tn)

    @pl.when(jnp.logical_and(phase == 0, j == 0))
    def _init():
        m_ref[...] = jnp.full(m_ref.shape, -jnp.inf, dtype=jnp.float32)
        l_ref[...] = jnp.zeros(l_ref.shape, dtype=jnp.float32)

    @pl.when(phase == 0)
    def _accumulate():
        logits = (
            jnp.dot(x_ref[...], w_ref[...], preferred_element_type=jnp.float32)
            + b_ref[...]
        )
        logits_ref[:, pl.ds(start, tn)] = logits
        m_prev = m_ref[...]
        m_new = jnp.maximum(m_prev, jnp.max(logits, axis=-1, keepdims=True))
        l_ref[...] = (
            jnp.exp(m_prev - m_new) * l_ref[...]
            + jnp.sum(jnp.exp(logits - m_new), axis=-1, keepdims=True)
        )
        m_ref[...] = m_new

    @pl.when(phase == 1)
    def _normalize():
        lse = m_ref[...] + jnp.log(l_ref[...])                       # (tm, 1) f32
        o_ref[...] = (logits_ref[:, pl.ds(start, tn)] - lse).astype(o_ref.dtype)


@functools.partial(jax.jit, static_argnames=("tm", "tn", "out_dtype", "vmem_limit"))
def _projection_call(x2d, w, b, *, tm, tn, out_dtype, vmem_limit):
    M_p, d_model = x2d.shape
    vocab_p = w.shape[1]
    nj = vocab_p // tn
    grid = (M_p // tm, 2, nj)

    kernel = functools.partial(_proj_logsoftmax_kernel, tn=tn)

    return pl.pallas_call(
        kernel,
        out_shape=jax.ShapeDtypeStruct((M_p, vocab_p), out_dtype),
        grid_spec=pltpu.PrefetchScalarGridSpec(
            num_scalar_prefetch=0,
            grid=grid,
            in_specs=[
                # x row tile: constant across phase/vocab -> one DMA per row tile.
                pl.BlockSpec((tm, d_model), lambda i, p, j: (i, 0)),
                # weight chunk: streamed over j in phase 0, frozen (no re-DMA) in phase 1.
                pl.BlockSpec((d_model, tn),
                             lambda i, p, j: (0, j * (1 - p) + (nj - 1) * p)),
                # bias chunk: same schedule as the weight.
                pl.BlockSpec((1, tn),
                             lambda i, p, j: (0, j * (1 - p) + (nj - 1) * p)),
            ],
            # output tile: held at (i, 0) during phase 0 (never written back), streamed in phase 1.
            out_specs=pl.BlockSpec((tm, tn), lambda i, p, j: (i, j * p)),
            scratch_shapes=[
                pltpu.VMEM((tm, vocab_p), jnp.float32),   # cached logits for the row tile
                pltpu.VMEM((tm, 1), jnp.float32),         # running max
                pltpu.VMEM((tm, 1), jnp.float32),         # running (rescaled) sum of exp
            ],
        ),
        compiler_params=pltpu.CompilerParams(
            dimension_semantics=("parallel", "arbitrary", "arbitrary"),
            vmem_limit_bytes=vmem_limit,
        ),
    )(x2d, w, b)


def projection_layer_prepared(x, w_prepared, b_prepared, *, vocab, out_dtype=None):
    """x: (B, S, d_model); w_prepared/b_prepared from prepare_projection_params()."""
    B, S, d_model = x.shape
    vocab_p = w_prepared.shape[1]
    if out_dtype is None:
        out_dtype = x.dtype        # matches the PyTorch module; pass bf16 to halve output HBM traffic
    out_dtype = np.dtype(out_dtype)
    M = B * S

    tn = choose_vocab_tile(vocab)
    cap = _vmem_capacity_bytes()
    tm, tn = _choose_tiles(M, d_model, vocab_p, tn, out_dtype.itemsize, cap)
    M_p = _round_up(M, tm)

    x2d = x.reshape(M, d_model).astype(jnp.bfloat16)
    if M_p != M:
        x2d = jnp.pad(x2d, ((0, M_p - M), (0, 0)))

    # Per-core VMEM accounting (scratch + double-buffered tiles + in-body temporaries).
    need = (
        tm * vocab_p * 4
        + 2 * tm * d_model * 2
        + 2 * d_model * tn * 2
        + 2 * tn * 4
        + 2 * tm * tn * out_dtype.itemsize
        + 4 * tm * 4
        + 4 * tm * tn * 4
    )
    vmem_limit = int(min(cap - 2 * 1024 * 1024, max(int(need * 1.3), 32 * 1024 * 1024)))

    out2d = _projection_call(x2d, w_prepared, b_prepared,
                             tm=tm, tn=tn, out_dtype=out_dtype, vmem_limit=vmem_limit)
    if M_p != M or vocab_p != vocab:
        out2d = out2d[:M, :vocab]
    return out2d.reshape(B, S, vocab)


def projection_layer(x, weight, bias, *, out_dtype=None):
    """Convenience wrapper (casts/pads params per call). Prefer prepare_projection_params once."""
    w, b = prepare_projection_params(weight, bias)
    return projection_layer_prepared(x, w, b, vocab=weight.shape[1], out_dtype=out_dtype)


if __name__ == "__main__":
    key = jax.random.PRNGKey(0)

    # --- Small config consistent with the module: x (2, 8, 32), vocab 128 ---
    batch, seq, d_model, vocab_size = 2, 8, 32, 128
    kx, kw, kb, key = jax.random.split(key, 4)
    x = jax.random.normal(kx, (batch, seq, d_model), dtype=jnp.float32)
    weight = jax.random.normal(kw, (d_model, vocab_size), dtype=jnp.float32) * 0.05
    bias = jax.random.normal(kb, (vocab_size,), dtype=jnp.float32) * 0.05

    # Production pattern: prepare (cast + pad) the params once, reuse across calls.
    w_p, b_p = prepare_projection_params(weight, bias)
    out = projection_layer_prepared(x, w_p, b_p, vocab=vocab_size)
    out = jax.block_until_ready(out)

    ref = jax.nn.log_softmax(jnp.einsum("bsd,dv->bsv", x, weight) + bias, axis=-1)
    assert out.shape == (batch, seq, vocab_size)
    assert bool(jnp.all(jnp.isfinite(out)))
    assert bool(jnp.allclose(out, ref, atol=2e-2, rtol=2e-2)), float(jnp.max(jnp.abs(out - ref)))

    # --- Second config exercising the tiled path (2 row tiles, 3 vocab chunks, padded rows/lanes) ---
    b2, s2, d2, v2 = 2, 24, 64, 4500
    kx2, kw2, kb2, key = jax.random.split(key, 4)
    x2 = jax.random.normal(kx2, (b2, s2, d2), dtype=jnp.float32)
    weight2 = jax.random.normal(kw2, (d2, v2), dtype=jnp.float32) * 0.05
    bias2 = jax.random.normal(kb2, (v2,), dtype=jnp.float32) * 0.05
    w2_p, b2_p = prepare_projection_params(weight2, bias2)
    out2 = jax.block_until_ready(projection_layer_prepared(x2, w2_p, b2_p, vocab=v2))
    ref2 = jax.nn.log_softmax(jnp.einsum("bsd,dv->bsv", x2, weight2) + bias2, axis=-1)
    assert out2.shape == (b2, s2, v2)
    assert bool(jnp.all(jnp.isfinite(out2)))
    assert bool(jnp.allclose(out2, ref2, atol=2e-2, rtol=2e-2)), float(jnp.max(jnp.abs(out2 - ref2)))

    print("KERNEL_OK")
</pallas_src>

<mosaic_0001>
module attributes {stable_mosaic.version = 11 : i64} {
  func.func @_proj_logsoftmax_kernel(%arg0: i32, %arg1: i32, %arg2: i32, %arg3: memref<16x32xbf16, #tpu.memory_space<vmem>>, %arg4: memref<32x128xbf16, #tpu.memory_space<vmem>>, %arg5: memref<1x128xf32, #tpu.memory_space<vmem>>, %arg6: memref<16x128xf32, #tpu.memory_space<vmem>>, %arg7: memref<16x128xf32, #tpu.memory_space<vmem>>, %arg8: memref<16x1xf32, #tpu.memory_space<vmem>>, %arg9: memref<16x1xf32, #tpu.memory_space<vmem>>) attributes {dimension_semantics = [#tpu.dimension_semantics<parallel>, #tpu.dimension_semantics<arbitrary>, #tpu.dimension_semantics<arbitrary>], iteration_bounds = array<i64: 1, 2, 1>, scalar_prefetch = 0 : i64, scratch_operands = 3 : i64, tpu.core_type = #tpu.core_type<tc>, window_params = [{transform_indices = @transform_0, window_bounds = array<i64: 16, 32>}, {transform_indices = @transform_1, window_bounds = array<i64: 32, 128>}, {transform_indices = @transform_2, window_bounds = array<i64: 1, 128>}, {transform_indices = @transform_3, window_bounds = array<i64: 16, 128>}]} {
    %c128_i32 = arith.constant 128 : i32
    %0 = arith.muli %arg2, %c128_i32 : i32
    %1 = tpu.assume_multiple %0, 128 : i32
    %c0_i32 = arith.constant 0 : i32
    %2 = arith.cmpi eq, %arg1, %c0_i32 : i32
    %c0_i32_0 = arith.constant 0 : i32
    %3 = arith.cmpi eq, %arg2, %c0_i32_0 : i32
    %4 = arith.andi %2, %3 : i1
    %5 = arith.extui %4 : i1 to i32
    %c0_i32_1 = arith.constant 0 : i32
    %6 = arith.cmpi ne, %5, %c0_i32_1 : i32
    scf.if %6 {
      %cst = arith.constant 0xFF800000 : f32
      %13 = vector.broadcast %cst : f32 to vector<16x1xf32>
      %c0 = arith.constant 0 : index
      %c0_5 = arith.constant 0 : index
      %14 = vector.load %arg8[%c0, %c0_5] : memref<16x1xf32, #tpu.memory_space<vmem>>, vector<16x1xf32>
      tpu.vector_store %arg8[%c0, %c0_5], %13 {strides = array<i32>} : memref<16x1xf32, #tpu.memory_space<vmem>>, vector<16x1xf32>,
      %cst_6 = arith.constant 0.000000e+00 : f32
      %15 = vector.broadcast %cst_6 : f32 to vector<16x1xf32>
      %c0_7 = arith.constant 0 : index
      %c0_8 = arith.constant 0 : index
      %16 = vector.load %arg9[%c0_7, %c0_8] : memref<16x1xf32, #tpu.memory_space<vmem>>, vector<16x1xf32>
      tpu.vector_store %arg9[%c0_7, %c0_8], %15 {strides = array<i32>} : memref<16x1xf32, #tpu.memory_space<vmem>>, vector<16x1xf32>,
    } else {
    }
    %c0_i32_2 = arith.constant 0 : i32
    %7 = arith.cmpi eq, %arg1, %c0_i32_2 : i32
    %8 = arith.extui %7 : i1 to i32
    %c0_i32_3 = arith.constant 0 : i32
    %9 = arith.cmpi ne, %8, %c0_i32_3 : i32
    scf.if %9 {
      %c0 = arith.constant 0 : index
      %c0_5 = arith.constant 0 : index
      %13 = vector.load %arg3[%c0, %c0_5] : memref<16x32xbf16, #tpu.memory_space<vmem>>, vector<16x32xbf16>
      %c0_6 = arith.constant 0 : index
      %c0_7 = arith.constant 0 : index
      %14 = vector.load %arg4[%c0_6, %c0_7] : memref<32x128xbf16, #tpu.memory_space<vmem>>, vector<32x128xbf16>
      %cst = arith.constant dense<0.000000e+00> : vector<16x128xf32>
      %15 = tpu.matmul %13, %14, %cst {dimension_numbers = #tpu.dot_dimension_numbers<[1], [0], [0], [1], [0, 0, 1, 1], [], []>} : vector<16x32xbf16>, vector<32x128xbf16>, vector<16x128xf32> -> vector<16x128xf32>
      %c0_8 = arith.constant 0 : index
      %c0_9 = arith.constant 0 : index
      %16 = vector.load %arg5[%c0_8, %c0_9] : memref<1x128xf32, #tpu.memory_space<vmem>>, vector<1x128xf32>
      %17 = vector.broadcast %16 : vector<1x128xf32> to vector<16x128xf32>
      %18 = arith.addf %15, %17 : vector<16x128xf32>
      %c0_10 = arith.constant 0 : index
      %19 = arith.index_cast %1 : i32 to index
      %20 = vector.load %arg7[%c0_10, %19] : memref<16x128xf32, #tpu.memory_space<vmem>>, vector<16x128xf32>
      tpu.vector_store %arg7[%c0_10, %19], %18 {strides = array<i32>} : memref<16x128xf32, #tpu.memory_space<vmem>>, vector<16x128xf32>,
      %c0_11 = arith.constant 0 : index
      %c0_12 = arith.constant 0 : index
      %21 = vector.load %arg8[%c0_11, %c0_12] : memref<16x1xf32, #tpu.memory_space<vmem>>, vector<16x1xf32>
      %cst_13 = arith.constant dense<0xFF800000> : vector<16xf32>
      %22 = vector.multi_reduction <maximumf>, %18, %cst_13 [1] : vector<16x128xf32> to vector<16xf32>
      %23 = vector.shape_cast %22 : vector<16xf32> to vector<16x1xf32>
      %24 = arith.maximumf %21, %23 : vector<16x1xf32>
      %25 = arith.subf %21, %24 : vector<16x1xf32>
      %26 = math.exp %25 : vector<16x1xf32>
      %c0_14 = arith.constant 0 : index
      %c0_15 = arith.constant 0 : index
      %27 = vector.load %arg9[%c0_14, %c0_15] : memref<16x1xf32, #tpu.memory_space<vmem>>, vector<16x1xf32>
      %28 = arith.mulf %26, %27 : vector<16x1xf32>
      %29 = vector.broadcast %24 : vector<16x1xf32> to vector<16x128xf32>
      %30 = arith.subf %18, %29 : vector<16x128xf32>
      %31 = math.exp %30 : vector<16x128xf32>
      %cst_16 = arith.constant dense<0.000000e+00> : vector<16xf32>
      %32 = vector.multi_reduction <add>, %31, %cst_16 [1] : vector<16x128xf32> to vector<16xf32>
      %33 = vector.shape_cast %32 : vector<16xf32> to vector<16x1xf32>
      %34 = arith.addf %28, %33 : vector<16x1xf32>
      %c0_17 = arith.constant 0 : index
      %c0_18 = arith.constant 0 : index
      %35 = vector.load %arg9[%c0_17, %c0_18] : memref<16x1xf32, #tpu.memory_space<vmem>>, vector<16x1xf32>
      tpu.vector_store %arg9[%c0_17, %c0_18], %34 {strides = array<i32>} : memref<16x1xf32, #tpu.memory_space<vmem>>, vector<16x1xf32>,
      %c0_19 = arith.constant 0 : index
      %c0_20 = arith.constant 0 : index
      %36 = vector.load %arg8[%c0_19, %c0_20] : memref<16x1xf32, #tpu.memory_space<vmem>>, vector<16x1xf32>
      tpu.vector_store %arg8[%c0_19, %c0_20], %24 {strides = array<i32>} : memref<16x1xf32, #tpu.memory_space<vmem>>, vector<16x1xf32>,
    } else {
    }
    %c1_i32 = arith.constant 1 : i32
    %10 = arith.cmpi eq, %arg1, %c1_i32 : i32
    %11 = arith.extui %10 : i1 to i32
    %c0_i32_4 = arith.constant 0 : i32
    %12 = arith.cmpi ne, %11, %c0_i32_4 : i32
    scf.if %12 {
      %c0 = arith.constant 0 : index
      %c0_5 = arith.constant 0 : index
      %13 = vector.load %arg8[%c0, %c0_5] : memref<16x1xf32, #tpu.memory_space<vmem>>, vector<16x1xf32>
      %c0_6 = arith.constant 0 : index
      %c0_7 = arith.constant 0 : index
      %14 = vector.load %arg9[%c0_6, %c0_7] : memref<16x1xf32, #tpu.memory_space<vmem>>, vector<16x1xf32>
      %15 = math.log %14 : vector<16x1xf32>
      %16 = arith.addf %13, %15 : vector<16x1xf32>
      %c0_8 = arith.constant 0 : index
      %17 = arith.index_cast %1 : i32 to index
      %18 = vector.load %arg7[%c0_8, %17] : memref<16x128xf32, #tpu.memory_space<vmem>>, vector<16x128xf32>
      %19 = vector.broadcast %16 : vector<16x1xf32> to vector<16x128xf32>
      %20 = arith.subf %18, %19 : vector<16x128xf32>
      %c0_9 = arith.constant 0 : index
      %c0_10 = arith.constant 0 : index
      %21 = vector.load %arg6[%c0_9, %c0_10] : memref<16x128xf32, #tpu.memory_space<vmem>>, vector<16x128xf32>
      tpu.vector_store %arg6[%c0_9, %c0_10], %20 {strides = array<i32>} : memref<16x128xf32, #tpu.memory_space<vmem>>, vector<16x128xf32>,
    } else {
    }
    return
  }
  func.func @transform_0(%arg0: i32, %arg1: i32, %arg2: i32) -> (i32, i32) {
    %c0_i32 = arith.constant 0 : i32
    %c0_i32_0 = arith.constant 0 : i32
    return %arg0, %c0_i32 : i32, i32
  }
  func.func @transform_1(%arg0: i32, %arg1: i32, %arg2: i32) -> (i32, i32) {
    %c1_i32 = arith.constant 1 : i32
    %0 = arith.subi %c1_i32, %arg1 : i32
    %1 = arith.muli %arg2, %0 : i32
    %c0_i32 = arith.constant 0 : i32
    %2 = arith.muli %c0_i32, %arg1 : i32
    %3 = arith.addi %1, %2 : i32
    %c0_i32_0 = arith.constant 0 : i32
    %c0_i32_1 = arith.constant 0 : i32
    return %c0_i32_0, %3 : i32, i32
  }
  func.func @transform_2(%arg0: i32, %arg1: i32, %arg2: i32) -> (i32, i32) {
    %c1_i32 = arith.constant 1 : i32
    %0 = arith.subi %c1_i32, %arg1 : i32
    %1 = arith.muli %arg2, %0 : i32
    %c0_i32 = arith.constant 0 : i32
    %2 = arith.muli %c0_i32, %arg1 : i32
    %3 = arith.addi %1, %2 : i32
    %c0_i32_0 = arith.constant 0 : i32
    %c0_i32_1 = arith.constant 0 : i32
    return %c0_i32_0, %3 : i32, i32
  }
  func.func @transform_3(%arg0: i32, %arg1: i32, %arg2: i32) -> (i32, i32) {
    %0 = arith.muli %arg2, %arg1 : i32
    %c0_i32 = arith.constant 0 : i32
    return %arg0, %0 : i32, i32
  }
}

</mosaic_0001>

<bundles_post_ra>
// kernel: _projection_call.1
= control target key start
LH: loop header
LB: loop body
LE: loop exit
PB: predicated region body
PF: predicated region fallthrough
CT: control target
= control target key end

     0   :  { %8 = vsyncpa [#allocation6], 0  ;;  %s986_s0 = inlined_call_operand.hbm [shape: bf16[16,32], index: 0, kind: input, shape index: {}]   ;;  %s987_s1 = inlined_call_operand.hbm [shape: bf16[32,128], index: 1, kind: input, shape index: {}]   ;;  %s988_s2 = inlined_call_operand.vmem [shape: f32[1,128], index: 2, kind: input, shape index: {}]   ;;  %s989_s3 = inlined_call_operand.hbm [shape: f32[16,128], index: 3, kind: output, shape index: {}]  }
   0x1   :  { %9 = vsyncpa [#allocation9], 0 }
   0x2   :  { %11 = vsyncpa [#allocation9 + $0x1], 0 }
   0x3   :  { %12 = vsyncpa [#allocation7], 0 }
   0x4   :  { %14 = vsyncpa [#allocation7 + $0x1], 0  ;;  %s846_s12 = smov 0   ;;  %s848_s13 = smov 0  }
   0x5   :  { %s850_s14 = smov 0  }
   0x6 LB: > { %s574_s15 = sadd.s32 4294967295, %s811_s14   ;;  %s575_s16 = sadd.s32 4294967294, %s811_s14   ;;  %s811_s14 = sphi %s850_s14, %s20_s14   ;;  %s807_s13 = sphi %s848_s13, %s1004_s13   ;;  %s803_s12 = sphi %s846_s12, %s1003_s12  }
   0x7   : > { %s35_s17 = sadd.s32 1, %s807_s13  ;;  %p576_p0 = scmp.ge.s32.totalorder %s811_s14, 1 }
   0x8   : > { %p37_p1 = scmp.ge.s32.totalorder %s35_s17, 2  ;;  %p160_p2 = scmp.lt.s32.totalorder %s811_s14, 3 }
   0x9   : > { %p868_p3 = scmp.eq.s32.totalorder %s574_s15, 0  ;;  %s813_s20 = smov [#allocation5]  }
   0xa   : > { %s1006_s17 = smov (%p37_p1, %s35_s17), 0  ;;  %p874_p4 = pnand %p576_p0, %p160_p2 }
   0xb   : > { %s993_s18 = scalar_select %p868_p3, 1, 0 }
   0xc   : > { %s994_s19 = scalar_select %p874_p4, 1, 0 }
   0xd   : > { %s175_s21 = sshll.u32 %s813_s20, 4  ;;  %p620_p5 = pneg %p874_p4  ;;  %s176_s21 = int_to_ptr.vmem [resolvable:$true] %s175_s21 }
   0xe   : > { %s695_s25 = scalar_lea.hbm %s986_s0, 128 }
   0xf   : > { %p883_p7 = pnand %p868_p3, %p620_p5  ;;  %p696_p10 = scmp.ne.s32.totalorder %s986_s0, %s695_s25 }
  0x10   : > { %p702_p0 = scmp.lt.u32.totalorder %s695_s25, %s986_s0 }
  0x11   : > { %p697_p11 = pneg %p883_p7 }
  0x13   : > { %p698_p12 = pnand %p697_p11, %p696_p10 }
  0x15   : > { %p699_p13 = pneg %p698_p12 }
  0x17   : > { %p704_p1 = pnand %p702_p0, %p699_p13 }
  0x19   : > { %707 = shalt.err (!%p704_p1)
}
  0x1a   : > { %s708_s30 = scalar_lea.vmem %s176_s21, 128  ;;  %p716_p9 = scmp.lt.s32.totalorder %s176_s21, %s176_s21 }
  0x1b   : > { %p709_p2 = scmp.ne.s32.totalorder %s176_s21, %s708_s30  ;;  %p717_p8 = scmp.lt.s32.totalorder %s708_s30, %s708_s30 }
  0x1d   : > { %p711_p5 = pnand %p709_p2, %p697_p11  ;;  %p718_p3 = por %p717_p8, %p716_p9 }
  0x1f   : > { %p712_p6 = pneg %p711_p5 }
  0x21   : > { %p719_p4 = pnand %p718_p3, %p712_p6 }
  0x23   : > { %722 = shalt.err (!%p719_p4)
}
  0x24   : > { %s814_s4 = smov 64   ;;  %s815_s5 = smov 4  }
  0x25   : > { %623 = dma.hbm_to_vmem [thread:$0]  (!%p883_p7), %s986_s0, 128, %s176_s21, [#allocation6], %s814_s4, %s814_s4, %s815_s5  }
  0x26   : > { %s816_s8 = smov [#allocation8]   ;;  %p996_p10 = scmp.lt.s32.totalorder %s811_s14, 2 }
  0x27   : > { %s201_s9 = sshll.u32 %s816_s8, 4  ;;  %p997_p11 = scmp.eq.s32.totalorder %s811_s14, 0  ;;  %s202_s9 = int_to_ptr.vmem [resolvable:$true] %s201_s9 }
  0x28   : > { %s723_s23 = scalar_lea.hbm %s987_s1, 256 }
  0x29   : > { %p909_p12 = pnand %p997_p11, %p996_p10  ;;  %p724_p3 = scmp.ne.s32.totalorder %s987_s1, %s723_s23 }
  0x2a   : > { %p730_p8 = scmp.lt.u32.totalorder %s723_s23, %s987_s1 }
  0x2b   : > { %p725_p4 = pneg %p909_p12 }
  0x2d   : > { %p726_p6 = pnand %p725_p4, %p724_p3 }
  0x2f   : > { %p727_p7 = pneg %p726_p6 }
  0x31   : > { %p732_p9 = pnand %p730_p8, %p727_p7 }
  0x33   : > { %735 = shalt.err (!%p732_p9)
}
  0x34   : > { %s736_s26 = scalar_lea.vmem %s202_s9, 256  ;;  %s743_s27 = scalar_lea.vmem %s202_s9, 512 }
  0x35   : > { %p737_p13 = scmp.ne.s32.totalorder %s202_s9, %s736_s26  ;;  %p744_p2 = scmp.lt.s32.totalorder %s202_s9, %s202_s9 }
  0x36   : > { %p745_p5 = scmp.lt.s32.totalorder %s743_s27, %s736_s26 }
  0x37   : > { %p739_p0 = pnand %p737_p13, %p725_p4 }
  0x38   : > { %p746_p10 = por %p745_p5, %p744_p2 }
  0x39   : > { %p740_p1 = pneg %p739_p0 }
  0x3b   : > { %p747_p11 = pnand %p746_p10, %p740_p1 }
  0x3d   : > { %750 = shalt.err (!%p747_p11)
}
  0x3e   : > { %627 = dma.hbm_to_vmem [thread:$0]  (!%p909_p12), %s987_s1, 256, %s202_s9, [#allocation9], %s814_s4, %s814_s4, %s815_s5  }
  0x3f   : > { %p999_p3 = scmp.ne.s32.totalorder %s994_s19, 0 }
  0x40   : > { %p1000_p6 = scmp.ne.s32.totalorder (!%p999_p3), %s993_s18, 0 }
  0x41   : > { %223 = sbr.rel (%p999_p3) target bundleno = 921 (0x399), region = 32 }
  0x48   : > { %790 = dma.done.wait (%p1000_p6), [#allocation6], 128  }
  0x49   : > { %792 = vsyncadd (%p1000_p6), [#allocation6], 4294967168 }
  0x4a   : > { %794 = dma.done.wait (%p1000_p6), [#allocation9], 256  }
  0x4b   : > { %796 = vsyncadd (%p1000_p6), [#allocation9], 4294967040  ;;  %p275_p4 = scmp.eq.s32.totalorder %s803_s12, 0 }
  0x4c   : > { %vm281_vm0 = vcmask (%p275_p4), 7168   ;;  %v817_v0 = vmov (%p275_p4), -inf   ;;  %v818_v1 = vmov (%p275_p4), 0.0  }
  0x4d   : > { %280 = sbr.rel (!%p275_p4) target bundleno = 84 (0x54), region = 44  ;;  %282 = vst.msk [vmem:[#allocation3] sm:$0xff] (%p275_p4), %vm281_vm0, %v817_v0  ;;  %283 = vst.msk [vmem:[#allocation3 + $0x8] sm:$0xff] (%p275_p4), %vm281_vm0, %v817_v0 }
  0x4e   : > { %284 = vst.msk [vmem:[#allocation4] sm:$0xff] (%p275_p4), %vm281_vm0, %v818_v1  ;;  %285 = vst.msk [vmem:[#allocation4 + $0x8] sm:$0xff] (%p275_p4), %vm281_vm0, %v818_v1 }
  0x54 PF: > { %p585_p12 = scmp.ne.s32.totalorder %s803_s12, 0 }
  0x55   : > { %v679_v2 = vld [vmem:[#allocation8] sm:$0xff] (!%p585_p12)   ;;  %v819_v3 = vmov (!%p585_p12), 0.0   ;;  %v680_v4 = vld [vmem:[#allocation8 + $0x8] sm:$0xff] (!%p585_p12)   ;;  %vm820_vm1 = vmmov (!%p585_p12), 0   ;;  %v681_v5 = vld [vmem:[#allocation5] sm:$0xff] (!%p585_p12)   ;;  %vm319_vm2 = vcmask (!%p585_p12), 261120  }
  0x56   : > { %288 = sbr.rel (%p585_p12) target bundleno = 744 (0x2e8), region = 48  ;;  %600 = vmatprep.subr.bf16.mxu0 (!%p585_p12), %v819_v3  ;;  %604 = vmatprep.mubr.msk.bf16.mxu0 (!%p585_p12), %vm820_vm1, %v819_v3  ;;  %v586_v6 = vld [vmem:[%s988_s2] ss:$0 sm:$0xff] (!%p585_p12)  ;;  %v821_v13 = vmov (!%p585_p12), 0   ;;  %v369_v14 = vld [vmem:[#allocation3] sm:$0xff] (!%p585_p12)  ;;  %vm409_vm3 = vcmask (!%p585_p12), 7168  }
  0x57   : > { %601 = vmatpush3.bf16.msra.mxu0 (!%p585_p12), %v679_v2  ;;  %677 = vset.pattern.permute.xlu1 (!%p585_p12), %v821_v13  ;;  %v370_v17 = vld [vmem:[#allocation3 + $0x8] sm:$0xff] (!%p585_p12)  ;;  %v383_v33 = vld [vmem:[#allocation4] sm:$0xff] (!%p585_p12)  ;;  %v384_v37 = vld [vmem:[#allocation4 + $0x8] sm:$0xff] (!%p585_p12) }
  0x58   : > { %602 = vmatprep.subr.bf16.mxu0 (!%p585_p12), %v819_v3  ;;  %678 = vset.pattern.permute.xlu0 (!%p585_p12), %v821_v13 }
  0x5b   : > { %603 = vmatpush3.bf16.msra.mxu0 (!%p585_p12), %v680_v4 }
  0x5e   : > { %605 = vmatmul.mubr.msk.bf16.vlgmr.msra.gmra.mrb[0].mxu0 %vm319_vm2, %v681_v5 }
 0x131   : > { %v357_v7 = vpop.f32.mrb[0].mxu0 }
 0x132   : > { %v358_v8 = vadd.f32 %v586_v6, %v357_v7  ;;  %v606_v9 = vpop.f32.mrb[1].mxu0 }
 0x133   : > { %v360_v10 = vpop.f32.mrb[2].mxu0 }
 0x134   : > { %367 = vst [vmem:[#allocation2] sm:$0xff] %v358_v8  ;;  %v361_v11 = vadd.f32 %v586_v6, %v360_v10  ;;  %371 = vmax.xlane.f32.xlu0 %v358_v8  ;;  %v607_v12 = vpop.f32.mrb[3].mxu0 }
 0x136   : > { %368 = vst [vmem:[#allocation2 + $0x8] sm:$0xff] %v361_v11 }
 0x138   : > { %373 = vmax.xlane.f32.xlu0 %v361_v11 }
 0x1c1   : > { %v372_v15 = vpop.xlane.xlu0 %371 }
 0x1c2   : > { %v375_v16 = vmax.f32 %v369_v14, %v372_v15 }
 0x1c4   : > { %v377_v18 = vsub.f32 %v369_v14, %v375_v16  ;;  %412 = vst.msk [vmem:[#allocation3] sm:$0xff] %vm409_vm3, %v375_v16  ;;  %389 = vperm.xlu1 %677, %v375_v16  }
 0x1c5   : > { %v374_v19 = vpop.xlane.xlu0 %373 }
 0x1c6   : > { %v376_v20 = vmax.f32 %v370_v17, %v374_v19  ;;  %v379_v30 = vmul.f32 1.442695, %v377_v18 }
 0x1c8   : > { %v378_v21 = vsub.f32 %v370_v17, %v376_v20  ;;  %413 = vst.msk [vmem:[#allocation3 + $0x8] sm:$0xff] %vm409_vm3, %v376_v20  ;;  %394 = vperm.xlu1 %677, %v376_v20  }
 0x1ca   : > { %v381_v31 = vmul.f32 1.442695, %v378_v21 }
 0x243   : > { %v390_v22 = vpop.permute.xlu1 %389 }
 0x244   : > { %v397_v23 = vsub.f32 %v358_v8, %v390_v22 }
 0x246   : > { %v399_v24 = vmul.f32 1.442695, %v397_v23 }
 0x247   : > { %v395_v25 = vpop.permute.xlu1 %394 }
 0x248   : > { %682 = vpow2.f32 %v399_v24  ;;  %v398_v26 = vsub.f32 %v361_v11, %v395_v25 }
 0x24a   : > { %v401_v27 = vmul.f32 1.442695, %v398_v26 }
 0x24c   : > { %684 = vpow2.f32 %v401_v27 }
 0x24d   : > { %686 = vpow2.f32 %v379_v30 }
 0x24e   : > { %688 = vpow2.f32 %v381_v31 }
 0x252   : > { %v683_v28 = vpop.eup %682 }
 0x253   : > { %403 = vadd.xlane.f32.xlu0 %v683_v28 }
 0x256   : > { %v685_v29 = vpop.eup %684 }
 0x257   : > { %405 = vadd.xlane.f32.xlu1 %v685_v29  ;;  %v687_v32 = vpop.eup %686 }
 0x258   : > { %v385_v34 = vmul.f32 %v687_v32, %v383_v33  ;;  %v689_v35 = vpop.eup %688 }
 0x259   : > { %v386_v39 = vmul.f32 %v689_v35, %v384_v37 }
 0x2e0   : > { %v404_v36 = vpop.xlane.xlu0 %403 }
 0x2e1   : > { %v407_v38 = vadd.f32 %v404_v36, %v385_v34 }
 0x2e3   : > { %410 = vst.msk [vmem:[#allocation4] sm:$0xff] %vm409_vm3, %v407_v38 }
 0x2e4   : > { %v406_v40 = vpop.xlane.xlu1 %405 }
 0x2e5   : > { %v408_v41 = vadd.f32 %v406_v40, %v386_v39 }
 0x2e7   : > { %411 = vst.msk [vmem:[#allocation4 + $0x8] sm:$0xff] %vm409_vm3, %v408_v41 }
 0x2e8 PF: > { %p591_p7 = scmp.ne.s32.totalorder %s803_s12, 1 }
 0x2e9   : > { %v822_v43 = vmov (!%p591_p7), 0   ;;  %v418_v46 = vld [vmem:[#allocation3] sm:$0xff] (!%p591_p7)  ;;  %v419_v49 = vld [vmem:[#allocation3 + $0x8] sm:$0xff] (!%p591_p7)  ;;  %v431_v53 = vld [vmem:[#allocation2] sm:$0xff] (!%p591_p7) }
 0x2ea   : > { %417 = sbr.rel (%p591_p7) target bundleno = 897 (0x381), region = 52  ;;  %v420_v42 = vld [vmem:[#allocation4] sm:$0xff] (!%p591_p7)  ;;  %690 = vset.pattern.permute.xlu0 (!%p591_p7), %v822_v43  ;;  %v432_v56 = vld [vmem:[#allocation2 + $0x8] sm:$0xff] (!%p591_p7) }
 0x2eb   : > { %691 = vlog2.f32 (!%p591_p7), %v420_v42 }
 0x2ee   : > { %v421_v44 = vld [vmem:[#allocation4 + $0x8] sm:$0xff] (!%p591_p7) }
 0x2ef   : > { %693 = vlog2.f32 (!%p591_p7), %v421_v44 }
 0x2f5   : > { %v692_v45 = vpop.eup %691 }
 0x2f6   : > { %v423_v48 = vmul.f32 0.6931472, %v692_v45 }
 0x2f8   : > { %v426_v51 = vadd.f32 %v423_v48, %v418_v46 }
 0x2f9   : > { %v694_v47 = vpop.eup %693 }
 0x2fa   : > { %v425_v50 = vmul.f32 0.6931472, %v694_v47  ;;  %435 = vperm.xlu0 %690, %v426_v51  }
 0x2fc   : > { %v427_v52 = vadd.f32 %v425_v50, %v419_v49 }
 0x2fe   : > { %440 = vperm.xlu0 %690, %v427_v52  }
 0x379   : > { %v436_v54 = vpop.permute.xlu0 %435 }
 0x37a   : > { %v443_v55 = vsub.f32 %v431_v53, %v436_v54 }
 0x37c   : > { %445 = vst [vmem:[#allocation10] sm:$0xff] %v443_v55 }
 0x37d   : > { %v441_v57 = vpop.permute.xlu0 %440 }
 0x37e   : > { %v444_v58 = vsub.f32 %v432_v56, %v441_v57 }
 0x380   : > { %446 = vst [vmem:[#allocation10 + $0x8] sm:$0xff] %v444_v58 }
 0x381 PF: > { %p951_p8 = scmp.eq.s32.totalorder %s574_s15, 1  ;;  %s823_s30 = smov [#allocation10]  }
 0x382   : > { %s463_s4 = sshll.u32 %s823_s30, 4  ;;  %s464_s4 = int_to_ptr.vmem [resolvable:$true] %s463_s4 }
 0x383   : > { %s751_s5 = scalar_lea.vmem %s464_s4, 256  ;;  %s757_s6 = scalar_lea.vmem %s464_s4, 512 }
 0x384   : > { %p752_p9 = scmp.ne.s32.totalorder %s464_s4, %s751_s5  ;;  %p758_p1 = scmp.lt.s32.totalorder %s464_s4, %s464_s4 }
 0x385   : > { %p759_p2 = scmp.lt.s32.totalorder %s757_s6, %s751_s5 }
 0x386   : > { %p753_p13 = pnand %p752_p9, %p951_p8 }
 0x387   : > { %p760_p5 = por %p759_p2, %p758_p1 }
 0x388   : > { %p754_p0 = pneg %p753_p13 }
 0x38a   : > { %p761_p10 = pnand %p760_p5, %p754_p0 }
 0x38c   : > { %764 = shalt.err (!%p761_p10)
}
 0x38d   : > { %s765_s8 = scalar_lea.hbm %s989_s3, 256 }
 0x38e   : > { %p766_p11 = scmp.ne.s32.totalorder %s989_s3, %s765_s8  ;;  %p771_p4 = scmp.lt.u32.totalorder %s765_s8, %s989_s3 }
 0x390   : > { %p767_p3 = pnand %p766_p11, %p951_p8 }
 0x392   : > { %p768_p6 = pneg %p767_p3 }
 0x394   : > { %p773_p12 = pnand %p771_p4, %p768_p6 }
 0x396   : > { %776 = shalt.err (!%p773_p12)
}
 0x397   : > { %s824_s23 = smov 128   ;;  %s825_s24 = smov 8  }
 0x398   : > { %617 = dma.vmem_to_hbm [thread:$0]  (%p951_p8), %s464_s4, 256, %s989_s3, [#allocation7], %s824_s23, %s824_s23, %s825_s24  }
 0x399 PF: > { %p639_p7 = scmp.eq.s32.totalorder %s575_s16, 1  ;;  %p1002_p9 = scmp.ge.s32.totalorder %s811_s14, 2 }
 0x39b   : > { %p629_p13 = pnand %p639_p7, %p1002_p9 }
 0x39d   : > { %798 = dma.done.wait (!%p629_p13), [#allocation7], 256  }
 0x39e   : > { %800 = vsyncadd (!%p629_p13), [#allocation7], 4294967040  ;;  %s20_s14 = sadd.s32 1, %s811_s14   ;;  %s1003_s12 = smov %s807_s13 }
 0x39f   : > { %p17_p0 = scmp.ge.s32.totalorder %s20_s14, 4   ;;  %s1004_s13 = smov %s1006_s17 }
 0x3a1   :  { %19 = sbr.rel (!%p17_p0) target bundleno = 6 (0x6), region = 100 }
 0x3a8   :  { %484 = vsyncpa [#allocation6], 1 }
 0x3a9   :  { %486 = vsyncpa [#allocation6 + $0x1], 1 }
 0x3aa   :  { %487 = vsyncpa [#allocation9], 1 }
 0x3ab   :  { %489 = vsyncpa [#allocation9 + $0x1], 1 }
 0x3ac   :  { %490 = vsyncpa [#allocation7], 1 }
 0x3ad   :  { %492 = vsyncpa [#allocation7 + $0x1], 1 }

</bundles_post_ra>
